<compile_context>
chip_gen: v7x
topology: tpu7x:2x2x1
jax: 0.10.0
libtpu: 0.0.40
codegen_flags: <defaults>
</compile_context>

<pallas_src>
import functools
import math

import jax
import jax.numpy as jnp
from jax.experimental import pallas as pl
from jax.experimental.pallas import tpu as pltpu

# Explicit scoped-VMEM budget: safe on v5e/v6e (128 MiB physical) and v7x (64 MiB).
_VMEM_LIMIT = 32 * 1024 * 1024


def _choose_tile(m, cap=512):
    """Largest row tile <= cap that divides m and is a multiple of 8, else m."""
    if m <= cap:
        return m
    for t in range(cap, 7, -8):
        if m % t == 0:
            return t
    return m  # fallback: single full-size tile (rare; keeps kernel correct)


# ---------------------------------------------------------------------------
# Pallas kernels
# ---------------------------------------------------------------------------
def _conv_mm_kernel(p_ref, w_ref, s_ref, b_ref, o_ref, *, apply_relu):
    """(tm, K) @ (K, Cout) on the MXU (bf16 in, f32 acc) + fused BN affine [+ ReLU]."""
    acc = jnp.dot(p_ref[...], w_ref[...], preferred_element_type=jnp.float32)
    y = acc * s_ref[...] + b_ref[...]
    if apply_relu:
        y = jnp.maximum(y, 0.0)
    o_ref[...] = y.astype(o_ref.dtype)


def _conv_mm_res_kernel(p_ref, w_ref, s_ref, b_ref, r_ref, o_ref, *, apply_relu):
    """Same as _conv_mm_kernel but with a fused residual add."""
    acc = jnp.dot(p_ref[...], w_ref[...], preferred_element_type=jnp.float32)
    y = acc * s_ref[...] + b_ref[...] + r_ref[...].astype(jnp.float32)
    if apply_relu:
        y = jnp.maximum(y, 0.0)
    o_ref[...] = y.astype(o_ref.dtype)


def _maxpool9_kernel(r0, r1, r2, r3, r4, r5, r6, r7, r8, o_ref):
    """Running max over the 9 shifted window views (each a (tm, C) tile)."""
    acc = r0[...]
    for r in (r1, r2, r3, r4, r5, r6, r7, r8):
        acc = jnp.maximum(acc, r[...])
    o_ref[...] = acc


def _aggregation_kernel(x_ref, o_ref, acc_ref, *, s_total):
    """aggregation = Sequential(L2Norm(dim=channel), GeM(p=3), Flatten()).

    Spatially tiled: per-pixel L2-normalize + clamp + cube accumulate into an f32
    (N, C) scratch; GeM mean + cube root finalized at the last grid step.
    """
    @pl.when(pl.program_id(0) == 0)
    def _():
        acc_ref[...] = jnp.zeros_like(acc_ref)

    x = x_ref[...].astype(jnp.float32)                         # (N, ts, C)
    # L2Norm == F.normalize(x, p=2, dim=channel), eps=1e-12
    nrm = jnp.sqrt(jnp.sum(x * x, axis=2, keepdims=True))      # (N, ts, 1)
    xn = x * pl.reciprocal(jnp.maximum(nrm, 1e-12), approx=True)
    # GeM: avg_pool(clamp(x, min=1e-6) ** 3) ** (1/3)
    xc = jnp.maximum(xn, 1e-6)
    acc_ref[...] += jnp.sum(xc * xc * xc, axis=1)               # (N, C)

    @pl.when(pl.program_id(0) == pl.num_programs(0) - 1)
    def _():
        pooled = acc_ref[...] * (1.0 / s_total)
        o_ref[...] = jnp.exp(jnp.log(pooled) / 3.0)             # cube root (pooled > 0)


# ---------------------------------------------------------------------------
# Glue: im2col, conv+BN wrapper, maxpool, aggregation, residual blocks
# ---------------------------------------------------------------------------
def _im2col(x, kh, kw, stride, pad):
    """x: (N, H, W, C) bf16 -> patches (N*OH*OW, kh*kw*C) bf16, plus OH, OW."""
    n, h, w, c = x.shape
    xp = jnp.pad(x, ((0, 0), (pad, pad), (pad, pad), (0, 0)))
    oh = (h + 2 * pad - kh) // stride + 1
    ow = (w + 2 * pad - kw) // stride + 1
    cols = []
    for i in range(kh):
        for j in range(kw):
            cols.append(xp[:, i:i + stride * oh:stride,
                           j:j + stride * ow:stride, :])        # (N, OH, OW, C)
    patches = jnp.stack(cols, axis=3)                           # (N, OH, OW, kh*kw, C)
    return patches.reshape(n * oh * ow, kh * kw * c), oh, ow


def conv_bn(x, conv_params, *, stride, pad, relu, residual=None):
    """Conv2d(bias=False) + folded BatchNorm [+ residual] [+ ReLU] via Pallas MXU."""
    w, scale, bias = conv_params                    # w: (kh, kw, Cin, Cout) HWIO, f32
    kh, kw, cin, cout = w.shape
    patches, oh, ow = _im2col(x, kh, kw, stride, pad)            # bf16
    m, k = patches.shape
    wm = w.reshape(k, cout).astype(jnp.bfloat16)

    # Pad tiny contraction dims (conv1: K = 7*7*1 = 49) up to 128 lanes (free zeros).
    if k < 128:
        patches = jnp.pad(patches, ((0, 0), (0, 128 - k)))
        wm = jnp.pad(wm, ((0, 128 - k), (0, 0)))
        k = 128

    tm = _choose_tile(m)
    grid = (m // tm,)

    in_specs = [
        pl.BlockSpec((tm, k), lambda i: (i, 0)),
        pl.BlockSpec((k, cout), lambda i: (0, 0)),
        pl.BlockSpec((1, cout), lambda i: (0, 0)),
        pl.BlockSpec((1, cout), lambda i: (0, 0)),
    ]
    args = [patches, wm, scale.reshape(1, cout), bias.reshape(1, cout)]
    if residual is None:
        kernel = functools.partial(_conv_mm_kernel, apply_relu=relu)
    else:
        kernel = functools.partial(_conv_mm_res_kernel, apply_relu=relu)
        in_specs.append(pl.BlockSpec((tm, cout), lambda i: (i, 0)))
        args.append(residual.reshape(m, cout))

    out = pl.pallas_call(
        kernel,
        grid=grid,
        in_specs=in_specs,
        out_specs=pl.BlockSpec((tm, cout), lambda i: (i, 0)),
        out_shape=jax.ShapeDtypeStruct((m, cout), jnp.bfloat16),
        compiler_params=pltpu.CompilerParams(
            dimension_semantics=("parallel",),
            vmem_limit_bytes=_VMEM_LIMIT),
    )(*args)

    return out.reshape(x.shape[0], oh, ow, cout)


def maxpool2d(x, k=3, stride=2, pad=1):
    """3x3 / stride-2 max pool: running max over 9 shifted views in-kernel."""
    n, h, w, c = x.shape
    xp = jnp.pad(x, ((0, 0), (pad, pad), (pad, pad), (0, 0)),
                 constant_values=-jnp.inf)
    oh = (h + 2 * pad - k) // stride + 1
    ow = (w + 2 * pad - k) // stride + 1
    m = n * oh * ow
    views = [xp[:, i:i + stride * oh:stride, j:j + stride * ow:stride, :].reshape(m, c)
             for i in range(k) for j in range(k)]

    tm = _choose_tile(m)
    out = pl.pallas_call(
        _maxpool9_kernel,
        grid=(m // tm,),
        in_specs=[pl.BlockSpec((tm, c), lambda i: (i, 0)) for _ in range(k * k)],
        out_specs=pl.BlockSpec((tm, c), lambda i: (i, 0)),
        out_shape=jax.ShapeDtypeStruct((m, c), x.dtype),
        compiler_params=pltpu.CompilerParams(
            dimension_semantics=("parallel",),
            vmem_limit_bytes=_VMEM_LIMIT),
    )(*views)
    return out.reshape(n, oh, ow, c)


def aggregate(x):
    """L2Norm (channels) -> GeM(p=3) -> Flatten, tiled over the spatial axis."""
    n, h, w, c = x.shape
    s_total = h * w
    feat = x.reshape(n, s_total, c)

    ts = s_total
    if s_total > 1024:
        for t in range(1024, 7, -8):
            if s_total % t == 0:
                ts = t
                break

    return pl.pallas_call(
        functools.partial(_aggregation_kernel, s_total=s_total),
        grid=(s_total // ts,),
        in_specs=[pl.BlockSpec((n, ts, c), lambda i: (0, i, 0))],
        out_specs=pl.BlockSpec((n, c), lambda i: (0, 0)),
        out_shape=jax.ShapeDtypeStruct((n, c), jnp.float32),
        scratch_shapes=[pltpu.VMEM((n, c), jnp.float32)],
        compiler_params=pltpu.CompilerParams(
            dimension_semantics=("arbitrary",),
            vmem_limit_bytes=_VMEM_LIMIT),
    )(feat)


def basic_block(x, blk):
    stride = blk["stride"]
    if "down" in blk:   # 1x1 stride-2 conv + BN shortcut
        identity = conv_bn(x, blk["down"], stride=stride, pad=0, relu=False)
    else:
        identity = x
    y = conv_bn(x, blk["conv1"], stride=stride, pad=1, relu=True)
    y = conv_bn(y, blk["conv2"], stride=1, pad=1, relu=True, residual=identity)
    return y


def geolocalization_forward(x_nchw, params):
    """GeoLocalizationNet.forward: backbone (resnet18 up to layer3) + aggregation."""
    x = jnp.transpose(x_nchw, (0, 2, 3, 1)).astype(jnp.bfloat16)   # NCHW -> NHWC, bf16

    # --- backbone: conv1(1->64,7x7,s2,p3,no bias) + BN + ReLU, maxpool, layer1-3
    x = conv_bn(x, params["conv1"], stride=2, pad=3, relu=True)
    x = maxpool2d(x)
    for layer in ("layer1", "layer2", "layer3"):
        for blk in params[layer]:
            x = basic_block(x, blk)

    # --- aggregation: L2Norm (channels) -> GeM(p=3) -> Flatten
    return aggregate(x)                                            # (N, features_dim)


# ---------------------------------------------------------------------------
# Deterministic synthetic parameters (no checkpoint loading)
# ---------------------------------------------------------------------------
def _make_conv(key, kh, kw, cin, cout):
    k1, k2, k3, k4, k5 = jax.random.split(key, 5)
    w = jax.random.normal(k1, (kh, kw, cin, cout), jnp.float32) / math.sqrt(kh * kw * cin)
    gamma = jax.random.uniform(k2, (cout,), jnp.float32, 0.5, 1.5)
    beta = jax.random.normal(k3, (cout,), jnp.float32) * 0.1
    mean = jax.random.normal(k4, (cout,), jnp.float32) * 0.1
    var = jax.random.uniform(k5, (cout,), jnp.float32, 0.5, 1.5)
    scale = gamma / jnp.sqrt(var + 1e-5)          # eval-mode BN folded
    bias = beta - mean * scale
    return (w, scale, bias)


def build_params(key):
    keys = iter(jax.random.split(key, 32))
    params = {"conv1": _make_conv(next(keys), 7, 7, 1, 64)}

    def make_block(cin, cout, stride):
        blk = {"stride": stride,
               "conv1": _make_conv(next(keys), 3, 3, cin, cout),
               "conv2": _make_conv(next(keys), 3, 3, cout, cout)}
        if stride != 1 or cin != cout:
            blk["down"] = _make_conv(next(keys), 1, 1, cin, cout)
        return blk

    params["layer1"] = [make_block(64, 64, 1), make_block(64, 64, 1)]
    params["layer2"] = [make_block(64, 128, 2), make_block(128, 128, 1)]
    params["layer3"] = [make_block(128, 256, 2), make_block(256, 256, 1)]
    return params


if __name__ == "__main__":
    key = jax.random.PRNGKey(0)
    pkey, xkey = jax.random.split(key)
    params = build_params(pkey)
    # NCHW input; backbone.conv1 was replaced with a 1-input-channel conv.
    x = jax.random.normal(xkey, (2, 1, 32, 32), jnp.float32)

    out = geolocalization_forward(x, params)
    out = jax.block_until_ready(out)

    assert out.shape == (2, 256), out.shape
    assert out.dtype == jnp.float32
    assert bool(jnp.all(jnp.isfinite(out)))
    print("KERNEL_OK")
</pallas_src>

<mosaic_0001>
module attributes {stable_mosaic.version = 11 : i64} {
  func.func @_conv_mm_kernel(%arg0: i32, %arg1: memref<512x128xbf16, #tpu.memory_space<vmem>>, %arg2: memref<128x64xbf16, #tpu.memory_space<vmem>>, %arg3: memref<1x64xf32, #tpu.memory_space<vmem>>, %arg4: memref<1x64xf32, #tpu.memory_space<vmem>>, %arg5: memref<512x64xbf16, #tpu.memory_space<vmem>>) attributes {dimension_semantics = [#tpu.dimension_semantics<parallel>], iteration_bounds = array<i64: 1>, scalar_prefetch = 0 : i64, scratch_operands = 0 : i64, tpu.core_type = #tpu.core_type<tc>, window_params = [{transform_indices = @transform_0, window_bounds = array<i64: 512, 128>}, {pipeline_mode = #tpu.pipeline_mode<synchronous>, transform_indices = @transform_1, window_bounds = array<i64: 128, 64>}, {pipeline_mode = #tpu.pipeline_mode<synchronous>, transform_indices = @transform_2, window_bounds = array<i64: 1, 64>}, {pipeline_mode = #tpu.pipeline_mode<synchronous>, transform_indices = @transform_3, window_bounds = array<i64: 1, 64>}, {transform_indices = @transform_4, window_bounds = array<i64: 512, 64>}]} {
    %c0 = arith.constant 0 : index
    %c0_0 = arith.constant 0 : index
    %0 = vector.load %arg1[%c0, %c0_0] : memref<512x128xbf16, #tpu.memory_space<vmem>>, vector<512x128xbf16>
    %c0_1 = arith.constant 0 : index
    %c0_2 = arith.constant 0 : index
    %1 = vector.load %arg2[%c0_1, %c0_2] : memref<128x64xbf16, #tpu.memory_space<vmem>>, vector<128x64xbf16>
    %cst = arith.constant dense<0.000000e+00> : vector<512x64xf32>
    %2 = tpu.matmul %0, %1, %cst {dimension_numbers = #tpu.dot_dimension_numbers<[1], [0], [0], [1], [0, 0, 1, 1], [], []>} : vector<512x128xbf16>, vector<128x64xbf16>, vector<512x64xf32> -> vector<512x64xf32>
    %c0_3 = arith.constant 0 : index
    %c0_4 = arith.constant 0 : index
    %3 = vector.load %arg3[%c0_3, %c0_4] : memref<1x64xf32, #tpu.memory_space<vmem>>, vector<1x64xf32>
    %4 = vector.broadcast %3 : vector<1x64xf32> to vector<512x64xf32>
    %5 = arith.mulf %2, %4 : vector<512x64xf32>
    %c0_5 = arith.constant 0 : index
    %c0_6 = arith.constant 0 : index
    %6 = vector.load %arg4[%c0_5, %c0_6] : memref<1x64xf32, #tpu.memory_space<vmem>>, vector<1x64xf32>
    %7 = vector.broadcast %6 : vector<1x64xf32> to vector<512x64xf32>
    %8 = arith.addf %5, %7 : vector<512x64xf32>
    %cst_7 = arith.constant 0.000000e+00 : f32
    %9 = vector.broadcast %cst_7 : f32 to vector<512x64xf32>
    %10 = arith.maximumf %8, %9 : vector<512x64xf32>
    %11 = arith.truncf %10 : vector<512x64xf32> to vector<512x64xbf16>
    %c0_8 = arith.constant 0 : index
    %c0_9 = arith.constant 0 : index
    %12 = vector.load %arg5[%c0_8, %c0_9] : memref<512x64xbf16, #tpu.memory_space<vmem>>, vector<512x64xbf16>
    tpu.vector_store %arg5[%c0_8, %c0_9], %11 {strides = array<i32>} : memref<512x64xbf16, #tpu.memory_space<vmem>>, vector<512x64xbf16>,
    return
  }
  func.func @transform_0(%arg0: i32) -> (i32, i32) {
    %c0_i32 = arith.constant 0 : i32
    %c0_i32_0 = arith.constant 0 : i32
    return %arg0, %c0_i32 : i32, i32
  }
  func.func @transform_1(%arg0: i32) -> (i32, i32) {
    %c0_i32 = arith.constant 0 : i32
    %c0_i32_0 = arith.constant 0 : i32
    %c0_i32_1 = arith.constant 0 : i32
    return %c0_i32, %c0_i32_0 : i32, i32
  }
  func.func @transform_2(%arg0: i32) -> (i32, i32) {
    %c0_i32 = arith.constant 0 : i32
    %c0_i32_0 = arith.constant 0 : i32
    %c0_i32_1 = arith.constant 0 : i32
    return %c0_i32, %c0_i32_0 : i32, i32
  }
  func.func @transform_3(%arg0: i32) -> (i32, i32) {
    %c0_i32 = arith.constant 0 : i32
    %c0_i32_0 = arith.constant 0 : i32
    %c0_i32_1 = arith.constant 0 : i32
    return %c0_i32, %c0_i32_0 : i32, i32
  }
  func.func @transform_4(%arg0: i32) -> (i32, i32) {
    %c0_i32 = arith.constant 0 : i32
    %c0_i32_0 = arith.constant 0 : i32
    return %arg0, %c0_i32 : i32, i32
  }
}

</mosaic_0001>

<bundles_post_ra>
// kernel: tpu_custom_call.1
= control target key start
LH: loop header
LB: loop body
LE: loop exit
PB: predicated region body
PF: predicated region fallthrough
CT: control target
= control target key end

     0   :  { %9 = vsyncpa [#allocation3], 0  ;;  %s1546_s15 = smov [#allocation2]   ;;  %s2004_s0 = inlined_call_operand.hbm [shape: bf16[512,128], index: 0, kind: input, shape index: {}]   ;;  %s2005_s1 = inlined_call_operand.vmem [shape: bf16[128,64], index: 1, kind: input, shape index: {}]   ;;  %s2006_s2 = inlined_call_operand.vmem [shape: f32[1,64], index: 2, kind: input, shape index: {}]   ;;  %s2007_s3 = inlined_call_operand.vmem [shape: f32[1,64], index: 3, kind: input, shape index: {}]   ;;  %s2008_s4 = inlined_call_operand.vmem [shape: bf16[512,64], index: 4, kind: output, shape index: {}]  }
   0x1   :  { %s15_s16 = sshll.u32 %s1546_s15, 4  ;;  %s1522_s19 = scalar_lea.hbm %s2004_s0, 4096  ;;  %s16_s16 = int_to_ptr.vmem [resolvable:$true] %s15_s16 }
   0x2   :  { %p1523_p0 = scmp.ne.s32.totalorder %s2004_s0, %s1522_s19  ;;  %p1526_p1 = scmp.lt.u32.totalorder %s1522_s19, %s2004_s0 }
   0x4   :  { %p1528_p2 = pnand %p1526_p1, %p1523_p0 }
   0x6   :  { %1531 = shalt.err (!%p1528_p2)
}
   0x7   :  { %s1532_s24 = scalar_lea.vmem %s16_s16, 4096  ;;  %p1537_p4 = scmp.lt.s32.totalorder %s16_s16, %s16_s16 }
   0x8   :  { %p1533_p3 = scmp.ne.s32.totalorder %s16_s16, %s1532_s24  ;;  %p1538_p5 = scmp.lt.s32.totalorder %s1532_s24, %s1532_s24 }
   0xa   :  { %p1539_p6 = por %p1538_p5, %p1537_p4 }
   0xc   :  { %p1540_p7 = pnand %p1539_p6, %p1533_p3 }
   0xe   :  { %1543 = shalt.err (!%p1540_p7)
}
   0xf   :  { %s1547_s25 = smov 64   ;;  %s1548_s26 = smov 4  }
  0x10   :  { %21 = dma.hbm_to_vmem [thread:$0]  %s2004_s0, 4096, %s16_s16, [#allocation3], %s1547_s25, %s1547_s25, %s1548_s26  }
  0x11   :  { %1544 = dma.done.wait [#allocation3], 4096  }
  0x12   :  { %1545 = vsyncadd [#allocation3], 4294963200  ;;  %v1482_v0 = vld [vmem:[%s2005_s1] sm:$0xff]   ;;  %v1483_v1 = vld [vmem:[%s2005_s1 + $0x8] sm:$0xff]   ;;  %vm1103_vm0 = vcmask 519168  }
  0x13   :  { %1383 = vmatprep.subr.bf16.mxu0 %v1482_v0  ;;  %1463 = vmatprep.subr.bf16.mxu1 %v1482_v0  ;;  %v1484_v2 = vld [vmem:[%s2005_s1 + $0x10] sm:$0xff]   ;;  %v1485_v3 = vld [vmem:[%s2005_s1 + $0x18] sm:$0xff]   ;;  %v1490_v4 = vld [vmem:[#allocation2] sm:$0xff]  }
  0x14   :  { %1384 = vmatpush3.bf16.msra.mxu0 %v1482_v0  ;;  %1471 = vmatpush3.bf16.msra.mxu1 %v1482_v0  ;;  %v1491_v5 = vld [vmem:[#allocation2 + $0x80] sm:$0xff]   ;;  %v1487_v7 = vld [vmem:[%s2005_s1 + $0x28] sm:$0xff]   ;;  %v1488_v8 = vld [vmem:[%s2005_s1 + $0x30] sm:$0xff]  }
  0x15   :  { %1385 = vmatprep.subr.bf16.mxu0 %v1483_v1  ;;  %1464 = vmatprep.subr.bf16.mxu1 %v1483_v1  ;;  %v1486_v6 = vld [vmem:[%s2005_s1 + $0x20] sm:$0xff]   ;;  %v1489_v9 = vld [vmem:[%s2005_s1 + $0x38] sm:$0xff]   ;;  %v1492_v10 = vld [vmem:[#allocation2 + $0x8] sm:$0xff]  }
  0x16   :  { %1399 = vmatprep.mubr.bf16.mxu0 %v1490_v4  ;;  %1431 = vmatprep.mubr.bf16.mxu1 %v1491_v5  ;;  %v1493_v11 = vld [vmem:[#allocation2 + $0x88] sm:$0xff]   ;;  %v1494_v12 = vld [vmem:[#allocation2 + $0x10] sm:$0xff]   ;;  %v1496_v14 = vld [vmem:[#allocation2 + $0x18] sm:$0xff]  }
  0x17   :  { %v1495_v13 = vld [vmem:[#allocation2 + $0x90] sm:$0xff]   ;;  %v1497_v15 = vld [vmem:[#allocation2 + $0x98] sm:$0xff]   ;;  %v1498_v16 = vld [vmem:[#allocation2 + $0x20] sm:$0xff]  }
  0x18   :  { %1386 = vmatpush3.bf16.msra.mxu0 %v1483_v1  ;;  %1472 = vmatpush3.bf16.msra.mxu1 %v1483_v1  ;;  %v1499_v17 = vld [vmem:[#allocation2 + $0xa0] sm:$0xff]   ;;  %v1500_v18 = vld [vmem:[#allocation2 + $0x28] sm:$0xff]   ;;  %v1502_v20 = vld [vmem:[#allocation2 + $0x30] sm:$0xff]  }
  0x19   :  { %1387 = vmatprep.subr.bf16.mxu0 %v1484_v2  ;;  %1465 = vmatprep.subr.bf16.mxu1 %v1484_v2  ;;  %v1501_v19 = vld [vmem:[#allocation2 + $0xa8] sm:$0xff]   ;;  %v1503_v21 = vld [vmem:[#allocation2 + $0xb0] sm:$0xff]   ;;  %v1504_v22 = vld [vmem:[#allocation2 + $0x38] sm:$0xff]  }
  0x1a   :  { %v1505_v23 = vld [vmem:[#allocation2 + $0xb8] sm:$0xff]   ;;  %v1506_v24 = vld [vmem:[#allocation2 + $0x40] sm:$0xff]   ;;  %v1508_v26 = vld [vmem:[#allocation2 + $0x48] sm:$0xff]  }
  0x1b   :  { %v1507_v25 = vld [vmem:[#allocation2 + $0xc0] sm:$0xff]   ;;  %v1509_v27 = vld [vmem:[#allocation2 + $0xc8] sm:$0xff]   ;;  %v1510_v28 = vld [vmem:[#allocation2 + $0x50] sm:$0xff]  }
  0x1c   :  { %1388 = vmatpush3.bf16.msra.mxu0 %v1484_v2  ;;  %1473 = vmatpush3.bf16.msra.mxu1 %v1484_v2  ;;  %v1511_v29 = vld [vmem:[#allocation2 + $0xd0] sm:$0xff]   ;;  %v1512_v30 = vld [vmem:[#allocation2 + $0x58] sm:$0xff]   ;;  %v1514_v32 = vld [vmem:[#allocation2 + $0x60] sm:$0xff]  }
  0x1d   :  { %1389 = vmatprep.subr.bf16.mxu0 %v1485_v3  ;;  %1466 = vmatprep.subr.bf16.mxu1 %v1485_v3  ;;  %v1513_v31 = vld [vmem:[#allocation2 + $0xd8] sm:$0xff]   ;;  %v1515_v33 = vld [vmem:[#allocation2 + $0xe0] sm:$0xff]   ;;  %v1516_v34 = vld [vmem:[#allocation2 + $0x68] sm:$0xff]  }
  0x1e   :  { %v1517_v35 = vld [vmem:[#allocation2 + $0xe8] sm:$0xff]   ;;  %v1518_v36 = vld [vmem:[#allocation2 + $0x70] sm:$0xff]   ;;  %v1520_v38 = vld [vmem:[#allocation2 + $0x78] sm:$0xff]  }
  0x1f   :  { %v1519_v37 = vld [vmem:[#allocation2 + $0xf0] sm:$0xff]   ;;  %v1521_v39 = vld [vmem:[#allocation2 + $0xf8] sm:$0xff]   ;;  %v1613_v40 = vld [vmem:[%s2006_s2] ss:$0 sm:$0xff] }
  0x20   :  { %1390 = vmatpush3.bf16.msra.mxu0 %v1485_v3  ;;  %1474 = vmatpush3.bf16.msra.mxu1 %v1485_v3  ;;  %v1618_v42 = vld [vmem:[%s2007_s3] ss:$0 sm:$0xff] }
  0x21   :  { %1391 = vmatprep.subr.bf16.mxu0 %v1486_v6  ;;  %1467 = vmatprep.subr.bf16.mxu1 %v1486_v6 }
  0x24   :  { %1392 = vmatpush3.bf16.msra.mxu0 %v1486_v6  ;;  %1475 = vmatpush3.bf16.msra.mxu1 %v1486_v6 }
  0x25   :  { %1393 = vmatprep.subr.bf16.mxu0 %v1487_v7  ;;  %1468 = vmatprep.subr.bf16.mxu1 %v1487_v7 }
  0x28   :  { %1394 = vmatpush3.bf16.msra.mxu0 %v1487_v7  ;;  %1476 = vmatpush3.bf16.msra.mxu1 %v1487_v7 }
  0x29   :  { %1395 = vmatprep.subr.bf16.mxu0 %v1488_v8  ;;  %1469 = vmatprep.subr.bf16.mxu1 %v1488_v8 }
  0x2c   :  { %1396 = vmatpush3.bf16.msra.mxu0 %v1488_v8  ;;  %1477 = vmatpush3.bf16.msra.mxu1 %v1488_v8 }
  0x2d   :  { %1397 = vmatprep.subr.bf16.mxu0 %v1489_v9  ;;  %1470 = vmatprep.subr.bf16.mxu1 %v1489_v9 }
  0x30   :  { %1398 = vmatpush3.bf16.msra.mxu0 %v1489_v9  ;;  %1478 = vmatpush3.bf16.msra.mxu1 %v1489_v9 }
  0x33   :  { %1400 = vmatmul.mubr.bf16.vlgmr.msra.gmra.mrb[0].mxu0 %v1492_v10  ;;  %1432 = vmatmul.mubr.bf16.vlgmr.msra.gmra.mrb[0].mxu1 %v1493_v11 }
  0x34   :  { %1403 = vmatprep.mubr.bf16.mxu0 %v1494_v12  ;;  %1435 = vmatprep.mubr.bf16.mxu1 %v1495_v13 }
  0x3b   :  { %1404 = vmatmul.mubr.bf16.gmra.mrb[4].mxu0 %v1496_v14  ;;  %1436 = vmatmul.mubr.bf16.gmra.mrb[4].mxu1 %v1497_v15 }
  0x3c   :  { %1407 = vmatprep.mubr.bf16.mxu0 %v1498_v16  ;;  %1439 = vmatprep.mubr.bf16.mxu1 %v1499_v17 }
  0x43   :  { %1408 = vmatmul.mubr.bf16.gmra.mrb[8].mxu0 %v1500_v18  ;;  %1440 = vmatmul.mubr.bf16.gmra.mrb[8].mxu1 %v1501_v19 }
  0x44   :  { %1411 = vmatprep.mubr.bf16.mxu0 %v1502_v20  ;;  %1443 = vmatprep.mubr.bf16.mxu1 %v1503_v21 }
  0x4b   :  { %1412 = vmatmul.mubr.bf16.gmra.mrb[12].mxu0 %v1504_v22  ;;  %1444 = vmatmul.mubr.bf16.gmra.mrb[12].mxu1 %v1505_v23 }
  0x4c   :  { %1415 = vmatprep.mubr.bf16.mxu0 %v1506_v24  ;;  %1447 = vmatprep.mubr.bf16.mxu1 %v1507_v25 }
  0x53   :  { %1416 = vmatmul.mubr.bf16.gmra.mrb[16].mxu0 %v1508_v26  ;;  %1448 = vmatmul.mubr.bf16.gmra.mrb[16].mxu1 %v1509_v27 }
  0x54   :  { %1419 = vmatprep.mubr.bf16.mxu0 %v1510_v28  ;;  %1451 = vmatprep.mubr.bf16.mxu1 %v1511_v29 }
  0x5b   :  { %1420 = vmatmul.mubr.bf16.gmra.mrb[20].mxu0 %v1512_v30  ;;  %1452 = vmatmul.mubr.bf16.gmra.mrb[20].mxu1 %v1513_v31 }
  0x5c   :  { %1423 = vmatprep.mubr.bf16.mxu0 %v1514_v32  ;;  %1455 = vmatprep.mubr.bf16.mxu1 %v1515_v33 }
  0x63   :  { %1424 = vmatmul.mubr.bf16.gmra.mrb[24].mxu0 %v1516_v34  ;;  %1456 = vmatmul.mubr.bf16.gmra.mrb[24].mxu1 %v1517_v35 }
  0x64   :  { %1427 = vmatprep.mubr.bf16.mxu0 %v1518_v36  ;;  %1459 = vmatprep.mubr.bf16.mxu1 %v1519_v37 }
  0x6b   :  { %1428 = vmatmul.mubr.bf16.gmra.mrb[28].mxu0 %v1520_v38  ;;  %1460 = vmatmul.mubr.bf16.gmra.mrb[28].mxu1 %v1521_v39 }
 0x106   :  { %v1401_v41 = vpop.f32.mrb[0].mxu0  ;;  %v1433_v43 = vpop.f32.mrb[0].mxu1 }
 0x107   :  { %v650_v44 = vmul.f32 %v1401_v41, %v1613_v40  ;;  %v682_v45 = vmul.f32 %v1433_v43, %v1613_v40  ;;  %v386_v46 = vpop.f32.mrb[1].mxu0  ;;  %v514_v47 = vpop.f32.mrb[1].mxu1 }
 0x108   :  { %v648_v48 = vmul.f32 %v1613_v40, %v386_v46  ;;  %v680_v49 = vmul.f32 %v1613_v40, %v514_v47  ;;  %v1402_v50 = vpop.f32.mrb[2].mxu0  ;;  %v1434_v51 = vpop.f32.mrb[2].mxu1 }
 0x109   :  { %v721_v52 = vadd.f32 %v1618_v42, %v650_v44  ;;  %v753_v53 = vadd.f32 %v1618_v42, %v682_v45  ;;  %v651_v54 = vmul.f32 %v1402_v50, %v1613_v40  ;;  %v683_v55 = vmul.f32 %v1434_v51, %v1613_v40  ;;  %v389_v56 = vpop.f32.mrb[3].mxu0  ;;  %v517_v57 = vpop.f32.mrb[3].mxu1 }
 0x10a   :  { %v719_v58 = vadd.f32 %v1618_v42, %v648_v48  ;;  %v751_v59 = vadd.f32 %v1618_v42, %v680_v49  ;;  %v649_v60 = vmul.f32 %v1613_v40, %v389_v56  ;;  %v681_v61 = vmul.f32 %v1613_v40, %v517_v57 }
 0x10b   :  { %v785_v62 = vmax.f32 %v721_v52, 0.0  ;;  %v817_v63 = vmax.f32 %v753_v53, 0.0  ;;  %v722_v0 = vadd.f32 %v1618_v42, %v651_v54  ;;  %v754_v1 = vadd.f32 %v1618_v42, %v683_v55 }
 0x10c   :  { %v783_v2 = vmax.f32 %v719_v58, 0.0  ;;  %v815_v3 = vmax.f32 %v751_v59, 0.0  ;;  %v720_v4 = vadd.f32 %v1618_v42, %v649_v60  ;;  %v752_v5 = vadd.f32 %v1618_v42, %v681_v61 }
 0x10d   :  { %v1281_v6 = vpack.c.bf16 %v785_v62, %v785_v62  ;;  %v1313_v7 = vpack.c.bf16 %v817_v63, %v817_v63  ;;  %v786_v8 = vmax.f32 %v722_v0, 0.0  ;;  %v818_v9 = vmax.f32 %v754_v1, 0.0 }
 0x10e   :  { %v1279_v10 = vpack.c.bf16 %v783_v2, %v783_v2  ;;  %v1311_v11 = vpack.c.bf16 %v815_v3, %v815_v3  ;;  %v784_v12 = vmax.f32 %v720_v4, 0.0  ;;  %v816_v13 = vmax.f32 %v752_v5, 0.0  ;;  %v1405_v14 = vpop.f32.mrb[4].mxu0  ;;  %v1437_v15 = vpop.f32.mrb[4].mxu1 }
 0x10f   :  { %1106 = vst.msk [vmem:[%s2008_s4 + $0x8] sm:$0xf] %vm1103_vm0, %v1281_v6  ;;  %1138 = vst.msk [vmem:[%s2008_s4 + $0x88] sm:$0xf] %vm1103_vm0, %v1313_v7  ;;  %v1282_v16 = vpack.c.bf16 %v786_v8, %v786_v8  ;;  %v1314_v17 = vpack.c.bf16 %v818_v9, %v818_v9  ;;  %v654_v18 = vmul.f32 %v1405_v14, %v1613_v40  ;;  %v402_v20 = vpop.f32.mrb[5].mxu0  ;;  %v530_v21 = vpop.f32.mrb[5].mxu1 }
 0x110   :  { %v686_v19 = vmul.f32 %v1437_v15, %v1613_v40  ;;  %1104 = vst.msk [vmem:[%s2008_s4] sm:$0xf] %vm1103_vm0, %v1279_v10  ;;  %1136 = vst.msk [vmem:[%s2008_s4 + $0x80] sm:$0xf] %vm1103_vm0, %v1311_v11  ;;  %v1280_v22 = vpack.c.bf16 %v784_v12, %v784_v12  ;;  %v1312_v23 = vpack.c.bf16 %v816_v13, %v816_v13  ;;  %v1406_v26 = vpop.f32.mrb[6].mxu0  ;;  %v1438_v27 = vpop.f32.mrb[6].mxu1 }
 0x111   :  { %v652_v24 = vmul.f32 %v1613_v40, %v402_v20  ;;  %v684_v25 = vmul.f32 %v1613_v40, %v530_v21  ;;  %1107 = vst.msk [vmem:[%s2008_s4 + $0xc] sm:$0xf] %vm1103_vm0, %v1282_v16  ;;  %1139 = vst.msk [vmem:[%s2008_s4 + $0x8c] sm:$0xf] %vm1103_vm0, %v1314_v17  ;;  %v725_v28 = vadd.f32 %v1618_v42, %v654_v18  ;;  %v405_v32 = vpop.f32.mrb[7].mxu0  ;;  %v533_v33 = vpop.f32.mrb[7].mxu1 }
 0x112   :  { %v757_v29 = vadd.f32 %v1618_v42, %v686_v19  ;;  %v655_v30 = vmul.f32 %v1406_v26, %v1613_v40  ;;  %v687_v31 = vmul.f32 %v1438_v27, %v1613_v40  ;;  %1105 = vst.msk [vmem:[%s2008_s4 + $0x4] sm:$0xf] %vm1103_vm0, %v1280_v22  ;;  %1137 = vst.msk [vmem:[%s2008_s4 + $0x84] sm:$0xf] %vm1103_vm0, %v1312_v23 }
 0x113   :  { %v723_v34 = vadd.f32 %v1618_v42, %v652_v24  ;;  %v755_v35 = vadd.f32 %v1618_v42, %v684_v25  ;;  %v653_v36 = vmul.f32 %v1613_v40, %v405_v32  ;;  %v685_v37 = vmul.f32 %v1613_v40, %v533_v33 }
 0x114   :  { %v789_v38 = vmax.f32 %v725_v28, 0.0  ;;  %v821_v39 = vmax.f32 %v757_v29, 0.0  ;;  %v726_v41 = vadd.f32 %v1618_v42, %v655_v30  ;;  %v758_v43 = vadd.f32 %v1618_v42, %v687_v31 }
 0x115   :  { %v787_v44 = vmax.f32 %v723_v34, 0.0  ;;  %v819_v45 = vmax.f32 %v755_v35, 0.0  ;;  %v724_v46 = vadd.f32 %v1618_v42, %v653_v36  ;;  %v756_v47 = vadd.f32 %v1618_v42, %v685_v37 }
 0x116   :  { %v1285_v48 = vpack.c.bf16 %v789_v38, %v789_v38  ;;  %v1317_v49 = vpack.c.bf16 %v821_v39, %v821_v39  ;;  %v790_v50 = vmax.f32 %v726_v41, 0.0  ;;  %v822_v51 = vmax.f32 %v758_v43, 0.0  ;;  %v1409_v56 = vpop.f32.mrb[8].mxu0  ;;  %v1441_v57 = vpop.f32.mrb[8].mxu1 }
 0x117   :  { %v1283_v52 = vpack.c.bf16 %v787_v44, %v787_v44  ;;  %v1315_v53 = vpack.c.bf16 %v819_v45, %v819_v45  ;;  %v788_v54 = vmax.f32 %v724_v46, 0.0  ;;  %v820_v55 = vmax.f32 %v756_v47, 0.0  ;;  %v418_v62 = vpop.f32.mrb[9].mxu0  ;;  %v546_v63 = vpop.f32.mrb[9].mxu1 }
 0x118   :  { %1110 = vst.msk [vmem:[%s2008_s4 + $0x18] sm:$0xf] %vm1103_vm0, %v1285_v48  ;;  %1142 = vst.msk [vmem:[%s2008_s4 + $0x98] sm:$0xf] %vm1103_vm0, %v1317_v49  ;;  %v1286_v58 = vpack.c.bf16 %v790_v50, %v790_v50  ;;  %v1318_v59 = vpack.c.bf16 %v822_v51, %v822_v51  ;;  %v658_v60 = vmul.f32 %v1409_v56, %v1613_v40  ;;  %v1410_v4 = vpop.f32.mrb[10].mxu0  ;;  %v1442_v5 = vpop.f32.mrb[10].mxu1 }
 0x119   :  { %v690_v61 = vmul.f32 %v1441_v57, %v1613_v40  ;;  %1108 = vst.msk [vmem:[%s2008_s4 + $0x10] sm:$0xf] %vm1103_vm0, %v1283_v52  ;;  %1140 = vst.msk [vmem:[%s2008_s4 + $0x90] sm:$0xf] %vm1103_vm0, %v1315_v53  ;;  %v1284_v0 = vpack.c.bf16 %v788_v54, %v788_v54  ;;  %v1316_v1 = vpack.c.bf16 %v820_v55, %v820_v55  ;;  %v421_v10 = vpop.f32.mrb[11].mxu0  ;;  %v549_v11 = vpop.f32.mrb[11].mxu1 }
 0x11a   :  { %v656_v2 = vmul.f32 %v1613_v40, %v418_v62  ;;  %v688_v3 = vmul.f32 %v1613_v40, %v546_v63  ;;  %1111 = vst.msk [vmem:[%s2008_s4 + $0x1c] sm:$0xf] %vm1103_vm0, %v1286_v58  ;;  %1143 = vst.msk [vmem:[%s2008_s4 + $0x9c] sm:$0xf] %vm1103_vm0, %v1318_v59  ;;  %v729_v6 = vadd.f32 %v1618_v42, %v658_v60 }
 0x11b   :  { %v761_v7 = vadd.f32 %v1618_v42, %v690_v61  ;;  %v659_v8 = vmul.f32 %v1410_v4, %v1613_v40  ;;  %v691_v9 = vmul.f32 %v1442_v5, %v1613_v40  ;;  %1109 = vst.msk [vmem:[%s2008_s4 + $0x14] sm:$0xf] %vm1103_vm0, %v1284_v0  ;;  %1141 = vst.msk [vmem:[%s2008_s4 + $0x94] sm:$0xf] %vm1103_vm0, %v1316_v1 }
 0x11c   :  { %v727_v12 = vadd.f32 %v1618_v42, %v656_v2  ;;  %v759_v13 = vadd.f32 %v1618_v42, %v688_v3  ;;  %v657_v14 = vmul.f32 %v1613_v40, %v421_v10  ;;  %v689_v15 = vmul.f32 %v1613_v40, %v549_v11 }
 0x11d   :  { %v793_v16 = vmax.f32 %v729_v6, 0.0  ;;  %v825_v17 = vmax.f32 %v761_v7, 0.0  ;;  %v730_v18 = vadd.f32 %v1618_v42, %v659_v8  ;;  %v762_v19 = vadd.f32 %v1618_v42, %v691_v9 }
 0x11e   :  { %v791_v20 = vmax.f32 %v727_v12, 0.0  ;;  %v823_v21 = vmax.f32 %v759_v13, 0.0  ;;  %v728_v22 = vadd.f32 %v1618_v42, %v657_v14  ;;  %v760_v23 = vadd.f32 %v1618_v42, %v689_v15  ;;  %v1413_v32 = vpop.f32.mrb[12].mxu0  ;;  %v1445_v33 = vpop.f32.mrb[12].mxu1 }
 0x11f   :  { %v1289_v24 = vpack.c.bf16 %v793_v16, %v793_v16  ;;  %v1321_v25 = vpack.c.bf16 %v825_v17, %v825_v17  ;;  %v794_v26 = vmax.f32 %v730_v18, 0.0  ;;  %v826_v27 = vmax.f32 %v762_v19, 0.0  ;;  %v434_v38 = vpop.f32.mrb[13].mxu0  ;;  %v562_v39 = vpop.f32.mrb[13].mxu1 }
 0x120   :  { %v1287_v28 = vpack.c.bf16 %v791_v20, %v791_v20  ;;  %v1319_v29 = vpack.c.bf16 %v823_v21, %v823_v21  ;;  %v792_v30 = vmax.f32 %v728_v22, 0.0  ;;  %v824_v31 = vmax.f32 %v760_v23, 0.0  ;;  %v1414_v46 = vpop.f32.mrb[14].mxu0  ;;  %v1446_v47 = vpop.f32.mrb[14].mxu1 }
 0x121   :  { %1114 = vst.msk [vmem:[%s2008_s4 + $0x28] sm:$0xf] %vm1103_vm0, %v1289_v24  ;;  %1146 = vst.msk [vmem:[%s2008_s4 + $0xa8] sm:$0xf] %vm1103_vm0, %v1321_v25  ;;  %v1290_v34 = vpack.c.bf16 %v794_v26, %v794_v26  ;;  %v1322_v35 = vpack.c.bf16 %v826_v27, %v826_v27  ;;  %v662_v36 = vmul.f32 %v1413_v32, %v1613_v40  ;;  %v437_v52 = vpop.f32.mrb[15].mxu0  ;;  %v565_v53 = vpop.f32.mrb[15].mxu1 }
 0x122   :  { %v694_v37 = vmul.f32 %v1445_v33, %v1613_v40  ;;  %1112 = vst.msk [vmem:[%s2008_s4 + $0x20] sm:$0xf] %vm1103_vm0, %v1287_v28  ;;  %1144 = vst.msk [vmem:[%s2008_s4 + $0xa0] sm:$0xf] %vm1103_vm0, %v1319_v29  ;;  %v1288_v41 = vpack.c.bf16 %v792_v30, %v792_v30  ;;  %v1320_v43 = vpack.c.bf16 %v824_v31, %v824_v31 }
 0x123   :  { %v660_v44 = vmul.f32 %v1613_v40, %v434_v38  ;;  %v692_v45 = vmul.f32 %v1613_v40, %v562_v39  ;;  %1115 = vst.msk [vmem:[%s2008_s4 + $0x2c] sm:$0xf] %vm1103_vm0, %v1290_v34  ;;  %1147 = vst.msk [vmem:[%s2008_s4 + $0xac] sm:$0xf] %vm1103_vm0, %v1322_v35  ;;  %v733_v48 = vadd.f32 %v1618_v42, %v662_v36 }
 0x124   :  { %v765_v49 = vadd.f32 %v1618_v42, %v694_v37  ;;  %v663_v50 = vmul.f32 %v1414_v46, %v1613_v40  ;;  %v695_v51 = vmul.f32 %v1446_v47, %v1613_v40  ;;  %1113 = vst.msk [vmem:[%s2008_s4 + $0x24] sm:$0xf] %vm1103_vm0, %v1288_v41  ;;  %1145 = vst.msk [vmem:[%s2008_s4 + $0xa4] sm:$0xf] %vm1103_vm0, %v1320_v43 }
 0x125   :  { %v731_v54 = vadd.f32 %v1618_v42, %v660_v44  ;;  %v763_v55 = vadd.f32 %v1618_v42, %v692_v45  ;;  %v661_v56 = vmul.f32 %v1613_v40, %v437_v52  ;;  %v693_v57 = vmul.f32 %v1613_v40, %v565_v53 }
 0x126   :  { %v797_v58 = vmax.f32 %v733_v48, 0.0  ;;  %v829_v59 = vmax.f32 %v765_v49, 0.0  ;;  %v734_v60 = vadd.f32 %v1618_v42, %v663_v50  ;;  %v766_v61 = vadd.f32 %v1618_v42, %v695_v51  ;;  %v1417_v10 = vpop.f32.mrb[16].mxu0  ;;  %v1449_v11 = vpop.f32.mrb[16].mxu1 }
 0x127   :  { %v795_v62 = vmax.f32 %v731_v54, 0.0  ;;  %v827_v63 = vmax.f32 %v763_v55, 0.0  ;;  %v732_v0 = vadd.f32 %v1618_v42, %v661_v56  ;;  %v764_v1 = vadd.f32 %v1618_v42, %v693_v57  ;;  %v450_v16 = vpop.f32.mrb[17].mxu0  ;;  %v578_v17 = vpop.f32.mrb[17].mxu1 }
 0x128   :  { %v1293_v2 = vpack.c.bf16 %v797_v58, %v797_v58  ;;  %v1325_v3 = vpack.c.bf16 %v829_v59, %v829_v59  ;;  %v798_v4 = vmax.f32 %v734_v60, 0.0  ;;  %v830_v5 = vmax.f32 %v766_v61, 0.0  ;;  %v1418_v22 = vpop.f32.mrb[18].mxu0  ;;  %v1450_v23 = vpop.f32.mrb[18].mxu1 }
 0x129   :  { %v1291_v6 = vpack.c.bf16 %v795_v62, %v795_v62  ;;  %v1323_v7 = vpack.c.bf16 %v827_v63, %v827_v63  ;;  %v796_v8 = vmax.f32 %v732_v0, 0.0  ;;  %v828_v9 = vmax.f32 %v764_v1, 0.0  ;;  %v453_v28 = vpop.f32.mrb[19].mxu0  ;;  %v581_v29 = vpop.f32.mrb[19].mxu1 }
 0x12a   :  { %1118 = vst.msk [vmem:[%s2008_s4 + $0x38] sm:$0xf] %vm1103_vm0, %v1293_v2  ;;  %1150 = vst.msk [vmem:[%s2008_s4 + $0xb8] sm:$0xf] %vm1103_vm0, %v1325_v3  ;;  %v1294_v12 = vpack.c.bf16 %v798_v4, %v798_v4  ;;  %v1326_v13 = vpack.c.bf16 %v830_v5, %v830_v5  ;;  %v666_v14 = vmul.f32 %v1417_v10, %v1613_v40 }
 0x12b   :  { %v698_v15 = vmul.f32 %v1449_v11, %v1613_v40  ;;  %1116 = vst.msk [vmem:[%s2008_s4 + $0x30] sm:$0xf] %vm1103_vm0, %v1291_v6  ;;  %1148 = vst.msk [vmem:[%s2008_s4 + $0xb0] sm:$0xf] %vm1103_vm0, %v1323_v7  ;;  %v1292_v18 = vpack.c.bf16 %v796_v8, %v796_v8  ;;  %v1324_v19 = vpack.c.bf16 %v828_v9, %v828_v9 }
 0x12c   :  { %v664_v20 = vmul.f32 %v1613_v40, %v450_v16  ;;  %v696_v21 = vmul.f32 %v1613_v40, %v578_v17  ;;  %1119 = vst.msk [vmem:[%s2008_s4 + $0x3c] sm:$0xf] %vm1103_vm0, %v1294_v12  ;;  %1151 = vst.msk [vmem:[%s2008_s4 + $0xbc] sm:$0xf] %vm1103_vm0, %v1326_v13  ;;  %v737_v24 = vadd.f32 %v1618_v42, %v666_v14 }
 0x12d   :  { %v769_v25 = vadd.f32 %v1618_v42, %v698_v15  ;;  %v667_v26 = vmul.f32 %v1418_v22, %v1613_v40  ;;  %v699_v27 = vmul.f32 %v1450_v23, %v1613_v40  ;;  %1117 = vst.msk [vmem:[%s2008_s4 + $0x34] sm:$0xf] %vm1103_vm0, %v1292_v18  ;;  %1149 = vst.msk [vmem:[%s2008_s4 + $0xb4] sm:$0xf] %vm1103_vm0, %v1324_v19 }
 0x12e   :  { %v735_v30 = vadd.f32 %v1618_v42, %v664_v20  ;;  %v767_v31 = vadd.f32 %v1618_v42, %v696_v21  ;;  %v665_v32 = vmul.f32 %v1613_v40, %v453_v28  ;;  %v697_v33 = vmul.f32 %v1613_v40, %v581_v29  ;;  %v1421_v52 = vpop.f32.mrb[20].mxu0  ;;  %v1453_v53 = vpop.f32.mrb[20].mxu1 }
 0x12f   :  { %v801_v34 = vmax.f32 %v737_v24, 0.0  ;;  %v833_v35 = vmax.f32 %v769_v25, 0.0  ;;  %v738_v36 = vadd.f32 %v1618_v42, %v667_v26  ;;  %v770_v37 = vadd.f32 %v1618_v42, %v699_v27  ;;  %v466_v58 = vpop.f32.mrb[21].mxu0  ;;  %v594_v59 = vpop.f32.mrb[21].mxu1 }
 0x130   :  { %v799_v38 = vmax.f32 %v735_v30, 0.0  ;;  %v831_v39 = vmax.f32 %v767_v31, 0.0  ;;  %v736_v41 = vadd.f32 %v1618_v42, %v665_v32  ;;  %v768_v43 = vadd.f32 %v1618_v42, %v697_v33  ;;  %v1422_v0 = vpop.f32.mrb[22].mxu0  ;;  %v1454_v1 = vpop.f32.mrb[22].mxu1 }
 0x131   :  { %v1297_v44 = vpack.c.bf16 %v801_v34, %v801_v34  ;;  %v1329_v45 = vpack.c.bf16 %v833_v35, %v833_v35  ;;  %v802_v46 = vmax.f32 %v738_v36, 0.0  ;;  %v834_v47 = vmax.f32 %v770_v37, 0.0  ;;  %v469_v6 = vpop.f32.mrb[23].mxu0  ;;  %v597_v7 = vpop.f32.mrb[23].mxu1 }
 0x132   :  { %v1295_v48 = vpack.c.bf16 %v799_v38, %v799_v38  ;;  %v1327_v49 = vpack.c.bf16 %v831_v39, %v831_v39  ;;  %v800_v50 = vmax.f32 %v736_v41, 0.0  ;;  %v832_v51 = vmax.f32 %v768_v43, 0.0 }
 0x133   :  { %1122 = vst.msk [vmem:[%s2008_s4 + $0x48] sm:$0xf] %vm1103_vm0, %v1297_v44  ;;  %1154 = vst.msk [vmem:[%s2008_s4 + $0xc8] sm:$0xf] %vm1103_vm0, %v1329_v45  ;;  %v1298_v54 = vpack.c.bf16 %v802_v46, %v802_v46  ;;  %v1330_v55 = vpack.c.bf16 %v834_v47, %v834_v47  ;;  %v670_v56 = vmul.f32 %v1421_v52, %v1613_v40 }
 0x134   :  { %v702_v57 = vmul.f32 %v1453_v53, %v1613_v40  ;;  %1120 = vst.msk [vmem:[%s2008_s4 + $0x40] sm:$0xf] %vm1103_vm0, %v1295_v48  ;;  %1152 = vst.msk [vmem:[%s2008_s4 + $0xc0] sm:$0xf] %vm1103_vm0, %v1327_v49  ;;  %v1296_v60 = vpack.c.bf16 %v800_v50, %v800_v50  ;;  %v1328_v61 = vpack.c.bf16 %v832_v51, %v832_v51 }
 0x135   :  { %v668_v62 = vmul.f32 %v1613_v40, %v466_v58  ;;  %v700_v63 = vmul.f32 %v1613_v40, %v594_v59  ;;  %1123 = vst.msk [vmem:[%s2008_s4 + $0x4c] sm:$0xf] %vm1103_vm0, %v1298_v54  ;;  %1155 = vst.msk [vmem:[%s2008_s4 + $0xcc] sm:$0xf] %vm1103_vm0, %v1330_v55  ;;  %v741_v2 = vadd.f32 %v1618_v42, %v670_v56 }
 0x136   :  { %v773_v3 = vadd.f32 %v1618_v42, %v702_v57  ;;  %v671_v4 = vmul.f32 %v1422_v0, %v1613_v40  ;;  %v703_v5 = vmul.f32 %v1454_v1, %v1613_v40  ;;  %1121 = vst.msk [vmem:[%s2008_s4 + $0x44] sm:$0xf] %vm1103_vm0, %v1296_v60  ;;  %1153 = vst.msk [vmem:[%s2008_s4 + $0xc4] sm:$0xf] %vm1103_vm0, %v1328_v61  ;;  %v1425_v28 = vpop.f32.mrb[24].mxu0  ;;  %v1457_v29 = vpop.f32.mrb[24].mxu1 }
 0x137   :  { %v739_v8 = vadd.f32 %v1618_v42, %v668_v62  ;;  %v771_v9 = vadd.f32 %v1618_v42, %v700_v63  ;;  %v669_v10 = vmul.f32 %v1613_v40, %v469_v6  ;;  %v701_v11 = vmul.f32 %v1613_v40, %v597_v7  ;;  %v482_v34 = vpop.f32.mrb[25].mxu0  ;;  %v610_v35 = vpop.f32.mrb[25].mxu1 }
 0x138   :  { %v805_v12 = vmax.f32 %v741_v2, 0.0  ;;  %v837_v13 = vmax.f32 %v773_v3, 0.0  ;;  %v742_v14 = vadd.f32 %v1618_v42, %v671_v4  ;;  %v774_v15 = vadd.f32 %v1618_v42, %v703_v5  ;;  %v1426_v41 = vpop.f32.mrb[26].mxu0  ;;  %v1458_v43 = vpop.f32.mrb[26].mxu1 }
 0x139   :  { %v803_v16 = vmax.f32 %v739_v8, 0.0  ;;  %v835_v17 = vmax.f32 %v771_v9, 0.0  ;;  %v740_v18 = vadd.f32 %v1618_v42, %v669_v10  ;;  %v772_v19 = vadd.f32 %v1618_v42, %v701_v11  ;;  %v485_v48 = vpop.f32.mrb[27].mxu0  ;;  %v613_v49 = vpop.f32.mrb[27].mxu1 }
 0x13a   :  { %v1301_v20 = vpack.c.bf16 %v805_v12, %v805_v12  ;;  %v1333_v21 = vpack.c.bf16 %v837_v13, %v837_v13  ;;  %v806_v22 = vmax.f32 %v742_v14, 0.0  ;;  %v838_v23 = vmax.f32 %v774_v15, 0.0 }
 0x13b   :  { %v1299_v24 = vpack.c.bf16 %v803_v16, %v803_v16  ;;  %v1331_v25 = vpack.c.bf16 %v835_v17, %v835_v17  ;;  %v804_v26 = vmax.f32 %v740_v18, 0.0  ;;  %v836_v27 = vmax.f32 %v772_v19, 0.0 }
 0x13c   :  { %1126 = vst.msk [vmem:[%s2008_s4 + $0x58] sm:$0xf] %vm1103_vm0, %v1301_v20  ;;  %1158 = vst.msk [vmem:[%s2008_s4 + $0xd8] sm:$0xf] %vm1103_vm0, %v1333_v21  ;;  %v1302_v30 = vpack.c.bf16 %v806_v22, %v806_v22  ;;  %v1334_v31 = vpack.c.bf16 %v838_v23, %v838_v23  ;;  %v674_v32 = vmul.f32 %v1425_v28, %v1613_v40 }
 0x13d   :  { %v706_v33 = vmul.f32 %v1457_v29, %v1613_v40  ;;  %1124 = vst.msk [vmem:[%s2008_s4 + $0x50] sm:$0xf] %vm1103_vm0, %v1299_v24  ;;  %1156 = vst.msk [vmem:[%s2008_s4 + $0xd0] sm:$0xf] %vm1103_vm0, %v1331_v25  ;;  %v1300_v36 = vpack.c.bf16 %v804_v26, %v804_v26  ;;  %v1332_v37 = vpack.c.bf16 %v836_v27, %v836_v27 }
 0x13e   :  { %v672_v38 = vmul.f32 %v1613_v40, %v482_v34  ;;  %v704_v39 = vmul.f32 %v1613_v40, %v610_v35  ;;  %1127 = vst.msk [vmem:[%s2008_s4 + $0x5c] sm:$0xf] %vm1103_vm0, %v1302_v30  ;;  %1159 = vst.msk [vmem:[%s2008_s4 + $0xdc] sm:$0xf] %vm1103_vm0, %v1334_v31  ;;  %v745_v44 = vadd.f32 %v1618_v42, %v674_v32  ;;  %v1429_v6 = vpop.f32.mrb[28].mxu0  ;;  %v1461_v7 = vpop.f32.mrb[28].mxu1 }
 0x13f   :  { %v777_v45 = vadd.f32 %v1618_v42, %v706_v33  ;;  %v675_v46 = vmul.f32 %v1426_v41, %v1613_v40  ;;  %v707_v47 = vmul.f32 %v1458_v43, %v1613_v40  ;;  %1125 = vst.msk [vmem:[%s2008_s4 + $0x54] sm:$0xf] %vm1103_vm0, %v1300_v36  ;;  %1157 = vst.msk [vmem:[%s2008_s4 + $0xd4] sm:$0xf] %vm1103_vm0, %v1332_v37  ;;  %v498_v12 = vpop.f32.mrb[29].mxu0  ;;  %v626_v13 = vpop.f32.mrb[29].mxu1 }
 0x140   :  { %v743_v50 = vadd.f32 %v1618_v42, %v672_v38  ;;  %v775_v51 = vadd.f32 %v1618_v42, %v704_v39  ;;  %v673_v52 = vmul.f32 %v1613_v40, %v485_v48  ;;  %v705_v53 = vmul.f32 %v1613_v40, %v613_v49  ;;  %v1430_v18 = vpop.f32.mrb[30].mxu0  ;;  %v1462_v19 = vpop.f32.mrb[30].mxu1 }
 0x141   :  { %v809_v54 = vmax.f32 %v745_v44, 0.0  ;;  %v841_v55 = vmax.f32 %v777_v45, 0.0  ;;  %v746_v56 = vadd.f32 %v1618_v42, %v675_v46  ;;  %v778_v57 = vadd.f32 %v1618_v42, %v707_v47  ;;  %v501_v24 = vpop.f32.mrb[31].mxu0  ;;  %v629_v25 = vpop.f32.mrb[31].mxu1 }
 0x142   :  { %v807_v58 = vmax.f32 %v743_v50, 0.0  ;;  %v839_v59 = vmax.f32 %v775_v51, 0.0  ;;  %v744_v60 = vadd.f32 %v1618_v42, %v673_v52  ;;  %v776_v61 = vadd.f32 %v1618_v42, %v705_v53 }
 0x143   :  { %v1305_v62 = vpack.c.bf16 %v809_v54, %v809_v54  ;;  %v1337_v63 = vpack.c.bf16 %v841_v55, %v841_v55  ;;  %v810_v0 = vmax.f32 %v746_v56, 0.0  ;;  %v842_v1 = vmax.f32 %v778_v57, 0.0 }
 0x144   :  { %v1303_v2 = vpack.c.bf16 %v807_v58, %v807_v58  ;;  %v1335_v3 = vpack.c.bf16 %v839_v59, %v839_v59  ;;  %v808_v4 = vmax.f32 %v744_v60, 0.0  ;;  %v840_v5 = vmax.f32 %v776_v61, 0.0 }
 0x145   :  { %1130 = vst.msk [vmem:[%s2008_s4 + $0x68] sm:$0xf] %vm1103_vm0, %v1305_v62  ;;  %1162 = vst.msk [vmem:[%s2008_s4 + $0xe8] sm:$0xf] %vm1103_vm0, %v1337_v63  ;;  %v1306_v8 = vpack.c.bf16 %v810_v0, %v810_v0  ;;  %v1338_v9 = vpack.c.bf16 %v842_v1, %v842_v1  ;;  %v678_v10 = vmul.f32 %v1429_v6, %v1613_v40 }
 0x146   :  { %v710_v11 = vmul.f32 %v1461_v7, %v1613_v40  ;;  %1128 = vst.msk [vmem:[%s2008_s4 + $0x60] sm:$0xf] %vm1103_vm0, %v1303_v2  ;;  %1160 = vst.msk [vmem:[%s2008_s4 + $0xe0] sm:$0xf] %vm1103_vm0, %v1335_v3  ;;  %v1304_v14 = vpack.c.bf16 %v808_v4, %v808_v4  ;;  %v1336_v15 = vpack.c.bf16 %v840_v5, %v840_v5 }
 0x147   :  { %v676_v16 = vmul.f32 %v1613_v40, %v498_v12  ;;  %v708_v17 = vmul.f32 %v1613_v40, %v626_v13  ;;  %1131 = vst.msk [vmem:[%s2008_s4 + $0x6c] sm:$0xf] %vm1103_vm0, %v1306_v8  ;;  %1163 = vst.msk [vmem:[%s2008_s4 + $0xec] sm:$0xf] %vm1103_vm0, %v1338_v9  ;;  %v749_v20 = vadd.f32 %v1618_v42, %v678_v10 }
 0x148   :  { %v781_v21 = vadd.f32 %v1618_v42, %v710_v11  ;;  %v679_v22 = vmul.f32 %v1430_v18, %v1613_v40  ;;  %v711_v23 = vmul.f32 %v1462_v19, %v1613_v40  ;;  %1129 = vst.msk [vmem:[%s2008_s4 + $0x64] sm:$0xf] %vm1103_vm0, %v1304_v14  ;;  %1161 = vst.msk [vmem:[%s2008_s4 + $0xe4] sm:$0xf] %vm1103_vm0, %v1336_v15 }
 0x149   :  { %v747_v26 = vadd.f32 %v1618_v42, %v676_v16  ;;  %v779_v27 = vadd.f32 %v1618_v42, %v708_v17  ;;  %v677_v28 = vmul.f32 %v1613_v40, %v501_v24  ;;  %v709_v29 = vmul.f32 %v1613_v40, %v629_v25 }
 0x14a   :  { %v813_v30 = vmax.f32 %v749_v20, 0.0  ;;  %v845_v31 = vmax.f32 %v781_v21, 0.0  ;;  %v750_v32 = vadd.f32 %v1618_v42, %v679_v22  ;;  %v782_v33 = vadd.f32 %v1618_v42, %v711_v23 }
 0x14b   :  { %v811_v34 = vmax.f32 %v747_v26, 0.0  ;;  %v843_v35 = vmax.f32 %v779_v27, 0.0  ;;  %v748_v36 = vadd.f32 %v1618_v42, %v677_v28  ;;  %v780_v37 = vadd.f32 %v1618_v42, %v709_v29 }
 0x14c   :  { %v1309_v38 = vpack.c.bf16 %v813_v30, %v813_v30  ;;  %v1341_v39 = vpack.c.bf16 %v845_v31, %v845_v31  ;;  %v814_v41 = vmax.f32 %v750_v32, 0.0  ;;  %v846_v43 = vmax.f32 %v782_v33, 0.0 }
 0x14d   :  { %v1307_v44 = vpack.c.bf16 %v811_v34, %v811_v34  ;;  %v1339_v45 = vpack.c.bf16 %v843_v35, %v843_v35  ;;  %v812_v46 = vmax.f32 %v748_v36, 0.0  ;;  %v844_v40 = vmax.f32 %v780_v37, 0.0 }
 0x14e   :  { %1134 = vst.msk [vmem:[%s2008_s4 + $0x78] sm:$0xf] %vm1103_vm0, %v1309_v38  ;;  %1166 = vst.msk [vmem:[%s2008_s4 + $0xf8] sm:$0xf] %vm1103_vm0, %v1341_v39  ;;  %v1310_v47 = vpack.c.bf16 %v814_v41, %v814_v41  ;;  %v1342_v42 = vpack.c.bf16 %v846_v43, %v846_v43 }
 0x14f   :  { %1132 = vst.msk [vmem:[%s2008_s4 + $0x70] sm:$0xf] %vm1103_vm0, %v1307_v44  ;;  %1164 = vst.msk [vmem:[%s2008_s4 + $0xf0] sm:$0xf] %vm1103_vm0, %v1339_v45  ;;  %v1308_v48 = vpack.c.bf16 %v812_v46, %v812_v46  ;;  %v1340_v49 = vpack.c.bf16 %v844_v40, %v844_v40 }
 0x150   :  { %1135 = vst.msk [vmem:[%s2008_s4 + $0x7c] sm:$0xf] %vm1103_vm0, %v1310_v47  ;;  %1167 = vst.msk [vmem:[%s2008_s4 + $0xfc] sm:$0xf] %vm1103_vm0, %v1342_v42 }
 0x151   :  { %1133 = vst.msk [vmem:[%s2008_s4 + $0x74] sm:$0xf] %vm1103_vm0, %v1308_v48  ;;  %1165 = vst.msk [vmem:[%s2008_s4 + $0xf4] sm:$0xf] %vm1103_vm0, %v1340_v49 }
 0x152   :  { %1172 = vsyncpa [#allocation3], 1 }

</bundles_post_ra>
